<compile_context>
chip_gen: v6e
topology: v6e:2x2x1
jax: 0.10.0
libtpu: 0.0.40
codegen_flags: <defaults>
</compile_context>

<pallas_src>
import math

import jax
import jax.numpy as jnp
from jax.experimental import pallas as pl
from jax.experimental.pallas import tpu as pltpu


def _phase_autoencoder_kernel(xf_ref, we_ref, be_ref, wd_ref, bd_ref, p_ref,
                              unit_ref, recon_ref):
    f = be_ref.shape[-1] // 2                       # fold factor (static)

    xf = xf_ref[...]                                # (tr, f*D) f32, lane-dense

    # Encoder (folded): one MXU matmul. raw layout: [row_j, c*f + q]
    # (all coord-0 values for the f folded rows, then all coord-1 values).
    raw = jnp.dot(xf, we_ref[...],
                  preferred_element_type=jnp.float32) + be_ref[...]   # (tr, 2f)

    # L2 norm over the 2-wide coordinate axis via contiguous lane slices (VPU).
    r0 = raw[:, 0:f]
    r1 = raw[:, f:2 * f]
    sumsq = r0 * r0 + r1 * r1                       # (tr, f)
    inv_norm = 1.0 / (jnp.sqrt(sumsq) + 1e-8)       # exact: keeps 1e-5 tolerance
    u0 = r0 * inv_norm
    u1 = r1 * inv_norm
    unit_cat = jnp.concatenate([u0, u1], axis=1)    # (tr, 2f), layout [c*f + q]

    # Interleave back to (B, 2) row-major memory order via a tiny permutation
    # matmul (identity when f == 1).  Unit stream is 2/D of recon traffic.
    unit_ref[...] = jnp.dot(unit_cat, p_ref[...],
                            preferred_element_type=jnp.float32
                            ).astype(unit_ref.dtype)

    # Decoder (folded): one MXU matmul producing the lane-dense (tr, f*D) block.
    recon = jnp.dot(unit_cat, wd_ref[...],
                    preferred_element_type=jnp.float32) + bd_ref[...]
    recon_ref[...] = recon.astype(recon_ref.dtype)


def _pick_fold(batch, dim, target_lanes=512, max_fold=128):
    """Fold factor f: f*dim is a multiple of 128 (>= target_lanes if possible)
    and f divides the batch.  Falls back to 1 (plain layout) if impossible."""
    f0 = 128 // math.gcd(dim, 128)
    f = f0
    while f * dim < target_lanes and f * 2 <= max(max_fold, f0):
        f *= 2
    while f > f0 and batch % f != 0:
        f //= 2
    if batch % f != 0:
        f = 1
    return f


def _vmem_plan():
    """(stream_budget_bytes, vmem_limit_bytes) per TPU generation."""
    try:
        kind = jax.devices()[0].device_kind.lower()
    except Exception:
        kind = ""
    if "v7" in kind:                       # 64 MiB physical VMEM
        return 20 * 1024 * 1024, 32 * 1024 * 1024
    if "v5" in kind or "v6" in kind:       # 128 MiB physical VMEM
        return 40 * 1024 * 1024, 64 * 1024 * 1024
    return 20 * 1024 * 1024, 32 * 1024 * 1024   # unknown: conservative


def _pick_tile_rows(rows, lane_width, fold, stream_budget):
    """Largest multiple-of-8 folded-row tile whose double-buffered x + recon
    + unit streams fit `stream_budget`, capped so the grid has >= 2 tiles."""
    unit_lanes = max(2 * fold, 128)                    # lane-padded unit tile
    per_row = 4 * (2 * lane_width + unit_lanes)        # f32: x + recon + unit
    n_buf = 2                                          # default double buffering
    tr = stream_budget // (n_buf * per_row)
    if rows >= 16:
        # Keep at least two grid steps: shards across v7x's 2 TensorCores and
        # gives the DMA pipeline something to overlap.
        half = -(-rows // 2)
        half = ((half + 7) // 8) * 8
        tr = min(tr, half)
    tr = min(tr, rows)
    if rows >= 8:
        tr = max(8, (tr // 8) * 8)
    else:
        tr = rows
    return tr


def phase_autoencoder_forward(x, enc_w, enc_b, dec_w, dec_b,
                              fold=None, tile_rows=None):
    """x: (B, D) f32. enc_w: (2, D), enc_b: (2,), dec_w: (D, 2), dec_b: (D,)."""
    B, D = x.shape
    f32 = jnp.float32

    f = int(fold) if fold is not None else _pick_fold(B, D)
    assert B % f == 0
    Dw = f * D                     # folded lane width
    R = B // f                     # folded rows

    we = enc_w.astype(f32)                         # (2, D)
    wd = dec_w.astype(f32)                         # (D, 2)
    eye_f = jnp.eye(f, dtype=f32)
    # Folded encoder weight:  we_big[q*D + d, c*f + q] = enc_w[c, d]
    we_big = jnp.einsum("qp,cd->qdcp", eye_f, we).reshape(Dw, 2 * f)
    # Folded decoder weight:  wd_big[c*f + q, q*D + d] = dec_w[d, c]
    wd_big = jnp.einsum("qp,dc->cqpd", eye_f, wd).reshape(2 * f, Dw)
    # Interleave permutation:  p_mat[c*f + q, 2*q + c] = 1
    p_mat = jnp.einsum("qp,ce->cqpe", eye_f,
                       jnp.eye(2, dtype=f32)).reshape(2 * f, 2 * f)
    be_t = jnp.repeat(enc_b.astype(f32), f).reshape(1, 2 * f)
    bd_t = jnp.tile(dec_b.astype(f32), f).reshape(1, Dw)

    xf = x.astype(f32).reshape(R, Dw)              # free contiguous reshape

    stream_budget, vmem_limit = _vmem_plan()
    tr = tile_rows if tile_rows is not None else _pick_tile_rows(
        R, Dw, f, stream_budget)
    grid = (pl.cdiv(R, tr),)

    flops = 8 * B * D * f + 8 * B * f              # folded encoder/decoder + interleave
    bytes_accessed = 4 * (2 * B * D + 4 * B + 2 * Dw * 2 * f + 4 * f * f
                          + 2 * f + Dw)
    cost = pl.CostEstimate(flops=flops, transcendentals=B,
                           bytes_accessed=bytes_accessed)

    unit_fold, recon_fold = pl.pallas_call(
        _phase_autoencoder_kernel,
        grid=grid,
        in_specs=[
            pl.BlockSpec((tr, Dw), lambda i: (i, 0)),        # x (folded rows)
            pl.BlockSpec((Dw, 2 * f), lambda i: (0, 0)),     # encoder W (folded), resident
            pl.BlockSpec((1, 2 * f), lambda i: (0, 0)),      # encoder bias (tiled)
            pl.BlockSpec((2 * f, Dw), lambda i: (0, 0)),     # decoder W (folded), resident
            pl.BlockSpec((1, Dw), lambda i: (0, 0)),         # decoder bias (tiled)
            pl.BlockSpec((2 * f, 2 * f), lambda i: (0, 0)),  # interleave permutation
        ],
        out_specs=(
            pl.BlockSpec((tr, 2 * f), lambda i: (i, 0)),     # unit coords (folded)
            pl.BlockSpec((tr, Dw), lambda i: (i, 0)),        # reconstruction (folded)
        ),
        out_shape=(
            jax.ShapeDtypeStruct((R, 2 * f), f32),
            jax.ShapeDtypeStruct((R, Dw), f32),
        ),
        compiler_params=pltpu.CompilerParams(
            dimension_semantics=("parallel",),
            vmem_limit_bytes=vmem_limit,
        ),
        cost_estimate=cost,
    )(xf, we_big, be_t, wd_big, bd_t, p_mat)

    # Folded outputs are the exact row-major memory of (B, 2) / (B, D).
    unit = unit_fold.reshape(B, 2)
    recon = recon_fold.reshape(B, D)
    return unit, recon


def _reference_forward(x, enc_w, enc_b, dec_w, dec_b):
    raw = x @ enc_w.T + enc_b
    norm = jnp.sqrt(jnp.sum(raw * raw, axis=1, keepdims=True)) + 1e-8
    unit = raw / norm
    recon = unit @ dec_w.T + dec_b
    return unit, recon


def _make_params(key, input_dim):
    k_ew, k_eb, k_dw, k_db = jax.random.split(key, 4)
    enc_bound = 1.0 / jnp.sqrt(jnp.float32(input_dim))
    enc_w = jax.random.uniform(k_ew, (2, input_dim), jnp.float32,
                               -enc_bound, enc_bound)
    enc_b = jax.random.uniform(k_eb, (2,), jnp.float32, -enc_bound, enc_bound)
    dec_bound = 1.0 / jnp.sqrt(jnp.float32(2))
    dec_w = jax.random.uniform(k_dw, (input_dim, 2), jnp.float32,
                               -dec_bound, dec_bound)
    dec_b = jax.random.uniform(k_db, (input_dim,), jnp.float32,
                               -dec_bound, dec_bound)
    return enc_w, enc_b, dec_w, dec_b


if __name__ == "__main__":
    key = jax.random.PRNGKey(0)

    # Case 1: module-native small shape (single folded tile, fold=16 -> 512 lanes).
    k1, k2, kp1, kp2 = jax.random.split(key, 4)
    batch, input_dim = 64, 32
    x1 = jax.random.normal(k1, (batch, input_dim), dtype=jnp.float32)
    p1 = _make_params(kp1, input_dim)
    unit1, recon1 = phase_autoencoder_forward(x1, *p1)
    jax.block_until_ready((unit1, recon1))
    ref_u1, ref_r1 = _reference_forward(x1, *p1)
    assert jnp.allclose(unit1, ref_u1, atol=1e-5, rtol=1e-5)
    assert jnp.allclose(recon1, ref_r1, atol=1e-5, rtol=1e-5)

    # Case 2: non-power-of-two batch + odd-ish D, exercising the multi-tile
    # pipelined grid with a partial final tile (fold=8 -> 384 lanes).
    batch2, dim2 = 1000, 48
    x2 = jax.random.normal(k2, (batch2, dim2), dtype=jnp.float32)
    p2 = _make_params(kp2, dim2)
    unit2, recon2 = phase_autoencoder_forward(x2, *p2)
    jax.block_until_ready((unit2, recon2))
    ref_u2, ref_r2 = _reference_forward(x2, *p2)
    assert jnp.allclose(unit2, ref_u2, atol=1e-5, rtol=1e-5)
    assert jnp.allclose(recon2, ref_r2, atol=1e-5, rtol=1e-5)

    print("KERNEL_OK")
</pallas_src>

<mosaic_0001>
module attributes {stable_mosaic.version = 11 : i64} {
  func.func @_phase_autoencoder_kernel(%arg0: i32, %arg1: memref<4x512xf32, #tpu.memory_space<vmem>>, %arg2: memref<512x32xf32, #tpu.memory_space<vmem>>, %arg3: memref<1x32xf32, #tpu.memory_space<vmem>>, %arg4: memref<32x512xf32, #tpu.memory_space<vmem>>, %arg5: memref<1x512xf32, #tpu.memory_space<vmem>>, %arg6: memref<32x32xf32, #tpu.memory_space<vmem>>, %arg7: memref<4x32xf32, #tpu.memory_space<vmem>>, %arg8: memref<4x512xf32, #tpu.memory_space<vmem>>) attributes {dimension_semantics = [#tpu.dimension_semantics<parallel>], iteration_bounds = array<i64: 1>, scalar_prefetch = 0 : i64, scratch_operands = 0 : i64, tpu.core_type = #tpu.core_type<tc>, window_params = [{transform_indices = @transform_0, window_bounds = array<i64: 4, 512>}, {pipeline_mode = #tpu.pipeline_mode<synchronous>, transform_indices = @transform_1, window_bounds = array<i64: 512, 32>}, {pipeline_mode = #tpu.pipeline_mode<synchronous>, transform_indices = @transform_2, window_bounds = array<i64: 1, 32>}, {pipeline_mode = #tpu.pipeline_mode<synchronous>, transform_indices = @transform_3, window_bounds = array<i64: 32, 512>}, {pipeline_mode = #tpu.pipeline_mode<synchronous>, transform_indices = @transform_4, window_bounds = array<i64: 1, 512>}, {pipeline_mode = #tpu.pipeline_mode<synchronous>, transform_indices = @transform_5, window_bounds = array<i64: 32, 32>}, {transform_indices = @transform_6, window_bounds = array<i64: 4, 32>}, {transform_indices = @transform_7, window_bounds = array<i64: 4, 512>}]} {
    %c0 = arith.constant 0 : index
    %c0_0 = arith.constant 0 : index
    %0 = vector.load %arg1[%c0, %c0_0] : memref<4x512xf32, #tpu.memory_space<vmem>>, vector<4x512xf32>
    %c0_1 = arith.constant 0 : index
    %c0_2 = arith.constant 0 : index
    %1 = vector.load %arg2[%c0_1, %c0_2] : memref<512x32xf32, #tpu.memory_space<vmem>>, vector<512x32xf32>
    %cst = arith.constant dense<0.000000e+00> : vector<4x32xf32>
    %2 = tpu.matmul %0, %1, %cst {dimension_numbers = #tpu.dot_dimension_numbers<[1], [0], [0], [1], [0, 0, 1, 1], [], []>} : vector<4x512xf32>, vector<512x32xf32>, vector<4x32xf32> -> vector<4x32xf32>
    %c0_3 = arith.constant 0 : index
    %c0_4 = arith.constant 0 : index
    %3 = vector.load %arg3[%c0_3, %c0_4] : memref<1x32xf32, #tpu.memory_space<vmem>>, vector<1x32xf32>
    %4 = vector.broadcast %3 : vector<1x32xf32> to vector<4x32xf32>
    %5 = arith.addf %2, %4 : vector<4x32xf32>
    %6 = vector.extract_strided_slice %5 {offsets = [0, 0], sizes = [4, 16], strides = [1, 1]} : vector<4x32xf32> to vector<4x16xf32>
    %7 = vector.extract_strided_slice %5 {offsets = [0, 16], sizes = [4, 16], strides = [1, 1]} : vector<4x32xf32> to vector<4x16xf32>
    %8 = arith.mulf %6, %6 : vector<4x16xf32>
    %9 = arith.mulf %7, %7 : vector<4x16xf32>
    %10 = arith.addf %8, %9 : vector<4x16xf32>
    %11 = math.sqrt %10 : vector<4x16xf32>
    %cst_5 = arith.constant 9.99999993E-9 : f32
    %12 = vector.broadcast %cst_5 : f32 to vector<4x16xf32>
    %13 = arith.addf %11, %12 : vector<4x16xf32>
    %cst_6 = arith.constant 1.000000e+00 : f32
    %14 = vector.broadcast %cst_6 : f32 to vector<4x16xf32>
    %15 = arith.divf %14, %13 : vector<4x16xf32>
    %16 = arith.mulf %6, %15 : vector<4x16xf32>
    %17 = arith.mulf %7, %15 : vector<4x16xf32>
    %18 = tpu.concatenate %16, %17 in 1 : vector<4x16xf32>, vector<4x16xf32> -> vector<4x32xf32>
    %c0_7 = arith.constant 0 : index
    %c0_8 = arith.constant 0 : index
    %19 = vector.load %arg6[%c0_7, %c0_8] : memref<32x32xf32, #tpu.memory_space<vmem>>, vector<32x32xf32>
    %cst_9 = arith.constant dense<0.000000e+00> : vector<4x32xf32>
    %20 = tpu.matmul %18, %19, %cst_9 {dimension_numbers = #tpu.dot_dimension_numbers<[1], [0], [0], [1], [0, 0, 1, 1], [], []>} : vector<4x32xf32>, vector<32x32xf32>, vector<4x32xf32> -> vector<4x32xf32>
    %c0_10 = arith.constant 0 : index
    %c0_11 = arith.constant 0 : index
    %21 = vector.load %arg7[%c0_10, %c0_11] : memref<4x32xf32, #tpu.memory_space<vmem>>, vector<4x32xf32>
    tpu.vector_store %arg7[%c0_10, %c0_11], %20 {strides = array<i32>} : memref<4x32xf32, #tpu.memory_space<vmem>>, vector<4x32xf32>,
    %c0_12 = arith.constant 0 : index
    %c0_13 = arith.constant 0 : index
    %22 = vector.load %arg4[%c0_12, %c0_13] : memref<32x512xf32, #tpu.memory_space<vmem>>, vector<32x512xf32>
    %cst_14 = arith.constant dense<0.000000e+00> : vector<4x512xf32>
    %23 = tpu.matmul %18, %22, %cst_14 {dimension_numbers = #tpu.dot_dimension_numbers<[1], [0], [0], [1], [0, 0, 1, 1], [], []>} : vector<4x32xf32>, vector<32x512xf32>, vector<4x512xf32> -> vector<4x512xf32>
    %c0_15 = arith.constant 0 : index
    %c0_16 = arith.constant 0 : index
    %24 = vector.load %arg5[%c0_15, %c0_16] : memref<1x512xf32, #tpu.memory_space<vmem>>, vector<1x512xf32>
    %25 = vector.broadcast %24 : vector<1x512xf32> to vector<4x512xf32>
    %26 = arith.addf %23, %25 : vector<4x512xf32>
    %c0_17 = arith.constant 0 : index
    %c0_18 = arith.constant 0 : index
    %27 = vector.load %arg8[%c0_17, %c0_18] : memref<4x512xf32, #tpu.memory_space<vmem>>, vector<4x512xf32>
    tpu.vector_store %arg8[%c0_17, %c0_18], %26 {strides = array<i32>} : memref<4x512xf32, #tpu.memory_space<vmem>>, vector<4x512xf32>,
    return
  }
  func.func @transform_0(%arg0: i32) -> (i32, i32) {
    %c0_i32 = arith.constant 0 : i32
    %c0_i32_0 = arith.constant 0 : i32
    return %arg0, %c0_i32 : i32, i32
  }
  func.func @transform_1(%arg0: i32) -> (i32, i32) {
    %c0_i32 = arith.constant 0 : i32
    %c0_i32_0 = arith.constant 0 : i32
    %c0_i32_1 = arith.constant 0 : i32
    return %c0_i32, %c0_i32_0 : i32, i32
  }
  func.func @transform_2(%arg0: i32) -> (i32, i32) {
    %c0_i32 = arith.constant 0 : i32
    %c0_i32_0 = arith.constant 0 : i32
    %c0_i32_1 = arith.constant 0 : i32
    return %c0_i32, %c0_i32_0 : i32, i32
  }
  func.func @transform_3(%arg0: i32) -> (i32, i32) {
    %c0_i32 = arith.constant 0 : i32
    %c0_i32_0 = arith.constant 0 : i32
    %c0_i32_1 = arith.constant 0 : i32
    return %c0_i32, %c0_i32_0 : i32, i32
  }
  func.func @transform_4(%arg0: i32) -> (i32, i32) {
    %c0_i32 = arith.constant 0 : i32
    %c0_i32_0 = arith.constant 0 : i32
    %c0_i32_1 = arith.constant 0 : i32
    return %c0_i32, %c0_i32_0 : i32, i32
  }
  func.func @transform_5(%arg0: i32) -> (i32, i32) {
    %c0_i32 = arith.constant 0 : i32
    %c0_i32_0 = arith.constant 0 : i32
    %c0_i32_1 = arith.constant 0 : i32
    return %c0_i32, %c0_i32_0 : i32, i32
  }
  func.func @transform_6(%arg0: i32) -> (i32, i32) {
    %c0_i32 = arith.constant 0 : i32
    %c0_i32_0 = arith.constant 0 : i32
    return %arg0, %c0_i32 : i32, i32
  }
  func.func @transform_7(%arg0: i32) -> (i32, i32) {
    %c0_i32 = arith.constant 0 : i32
    %c0_i32_0 = arith.constant 0 : i32
    return %arg0, %c0_i32 : i32, i32
  }
}

</mosaic_0001>

<bundles_post_ra>
// kernel: tpu_custom_call.1
= control target key start
LH: loop header
LB: loop body
LE: loop exit
PB: predicated region body
PF: predicated region fallthrough
CT: control target
= control target key end

     0   :  { %13 = vsyncpa [#allocation3], 0  ;;  %s1033_s0 = inlined_call_operand.vmem [shape: f32[4,512], index: 0, kind: input, shape index: {}]   ;;  %s1034_s1 = inlined_call_operand.vmem [shape: f32[512,32], index: 1, kind: input, shape index: {}]   ;;  %s1035_s2 = inlined_call_operand.vmem [shape: f32[1,32], index: 2, kind: input, shape index: {}]   ;;  %s1036_s3 = inlined_call_operand.vmem [shape: f32[32,512], index: 3, kind: input, shape index: {}]   ;;  %s1037_s4 = inlined_call_operand.vmem [shape: f32[1,512], index: 4, kind: input, shape index: {}]   ;;  %s1038_s5 = inlined_call_operand.vmem [shape: f32[32,32], index: 5, kind: input, shape index: {}]   ;;  %s1039_s6 = inlined_call_operand.hbm [shape: f32[4,32], index: 6, kind: output, shape index: {0}]   ;;  %s1040_s7 = inlined_call_operand.hbm [shape: f32[4,512], index: 7, kind: output, shape index: {1}]  }
   0x1   :  { %v60_v0 = vld [vmem:[%s1034_s1 + $0xf8] sm:$0xff]  ;;  %v59_v4 = vld [vmem:[%s1034_s1 + $0xf0] sm:$0xff]  ;;  %v58_v8 = vld [vmem:[%s1034_s1 + $0xe8] sm:$0xff] }
   0x2   :  { %v92_v1 = vld [vmem:[%s1034_s1 + $0x1f8] sm:$0xff]  ;;  %572 = vmatprep.subr.mxu0 %v60_v0  ;;  %v91_v5 = vld [vmem:[%s1034_s1 + $0x1f0] sm:$0xff]  ;;  %v90_v9 = vld [vmem:[%s1034_s1 + $0x1e8] sm:$0xff] }
   0x3   :  { %v44_v2 = vld [vmem:[%s1034_s1 + $0x78] sm:$0xff]  ;;  %607 = vmatprep.subr.mxu1 %v92_v1  ;;  %v43_v6 = vld [vmem:[%s1034_s1 + $0x70] sm:$0xff]  ;;  %v42_v10 = vld [vmem:[%s1034_s1 + $0x68] sm:$0xff] }
   0x4   :  { %v76_v3 = vld [vmem:[%s1034_s1 + $0x178] sm:$0xff]  ;;  %573 = vmatpush3.msra.mxu0 %v44_v2  ;;  %v75_v7 = vld [vmem:[%s1034_s1 + $0x170] sm:$0xff]  ;;  %v74_v11 = vld [vmem:[%s1034_s1 + $0x168] sm:$0xff] }
   0x5   :  { %608 = vmatpush3.msra.mxu1 %v76_v3  ;;  %574 = vmatprep.subr.mxu0 %v59_v4  ;;  %v57_v12 = vld [vmem:[%s1034_s1 + $0xe0] sm:$0xff]  ;;  %v56_v16 = vld [vmem:[%s1034_s1 + $0xd8] sm:$0xff]  ;;  %v55_v20 = vld [vmem:[%s1034_s1 + $0xd0] sm:$0xff] }
   0x6   :  { %609 = vmatprep.subr.mxu1 %v91_v5  ;;  %575 = vmatpush3.msra.mxu0 %v43_v6  ;;  %v89_v13 = vld [vmem:[%s1034_s1 + $0x1e0] sm:$0xff]  ;;  %v88_v17 = vld [vmem:[%s1034_s1 + $0x1d8] sm:$0xff]  ;;  %v87_v21 = vld [vmem:[%s1034_s1 + $0x1d0] sm:$0xff] }
   0x7   :  { %610 = vmatpush3.msra.mxu1 %v75_v7  ;;  %576 = vmatprep.subr.mxu0 %v58_v8  ;;  %v41_v14 = vld [vmem:[%s1034_s1 + $0x60] sm:$0xff]  ;;  %v40_v18 = vld [vmem:[%s1034_s1 + $0x58] sm:$0xff]  ;;  %v39_v22 = vld [vmem:[%s1034_s1 + $0x50] sm:$0xff] }
   0x8   :  { %611 = vmatprep.subr.mxu1 %v90_v9  ;;  %v73_v15 = vld [vmem:[%s1034_s1 + $0x160] sm:$0xff]  ;;  %577 = vmatpush3.msra.mxu0 %v42_v10  ;;  %v72_v19 = vld [vmem:[%s1034_s1 + $0x158] sm:$0xff]  ;;  %v71_v23 = vld [vmem:[%s1034_s1 + $0x150] sm:$0xff] }
   0x9   :  { %612 = vmatpush3.msra.mxu1 %v74_v11  ;;  %578 = vmatprep.subr.mxu0 %v57_v12  ;;  %v54_v24 = vld [vmem:[%s1034_s1 + $0xc8] sm:$0xff]  ;;  %v53_v28 = vld [vmem:[%s1034_s1 + $0xc0] sm:$0xff]  ;;  %v52_v32 = vld [vmem:[%s1034_s1 + $0xb8] sm:$0xff] }
   0xa   :  { %613 = vmatprep.subr.mxu1 %v89_v13  ;;  %579 = vmatpush3.msra.mxu0 %v41_v14  ;;  %v86_v25 = vld [vmem:[%s1034_s1 + $0x1c8] sm:$0xff]  ;;  %v85_v29 = vld [vmem:[%s1034_s1 + $0x1c0] sm:$0xff]  ;;  %v84_v33 = vld [vmem:[%s1034_s1 + $0x1b8] sm:$0xff] }
   0xb   :  { %614 = vmatpush3.msra.mxu1 %v73_v15  ;;  %580 = vmatprep.subr.mxu0 %v56_v16  ;;  %v38_v26 = vld [vmem:[%s1034_s1 + $0x48] sm:$0xff]  ;;  %v37_v30 = vld [vmem:[%s1034_s1 + $0x40] sm:$0xff]  ;;  %v36_v34 = vld [vmem:[%s1034_s1 + $0x38] sm:$0xff] }
   0xc   :  { %615 = vmatprep.subr.mxu1 %v88_v17  ;;  %581 = vmatpush3.msra.mxu0 %v40_v18  ;;  %v70_v27 = vld [vmem:[%s1034_s1 + $0x148] sm:$0xff]  ;;  %v69_v31 = vld [vmem:[%s1034_s1 + $0x140] sm:$0xff]  ;;  %v68_v35 = vld [vmem:[%s1034_s1 + $0x138] sm:$0xff] }
   0xd   :  { %616 = vmatpush3.msra.mxu1 %v72_v19  ;;  %582 = vmatprep.subr.mxu0 %v55_v20  ;;  %v51_v36 = vld [vmem:[%s1034_s1 + $0xb0] sm:$0xff]  ;;  %v50_v40 = vld [vmem:[%s1034_s1 + $0xa8] sm:$0xff]  ;;  %v49_v44 = vld [vmem:[%s1034_s1 + $0xa0] sm:$0xff] }
   0xe   :  { %617 = vmatprep.subr.mxu1 %v87_v21  ;;  %583 = vmatpush3.msra.mxu0 %v39_v22  ;;  %v83_v37 = vld [vmem:[%s1034_s1 + $0x1b0] sm:$0xff]  ;;  %v82_v41 = vld [vmem:[%s1034_s1 + $0x1a8] sm:$0xff]  ;;  %v81_v45 = vld [vmem:[%s1034_s1 + $0x1a0] sm:$0xff] }
   0xf   :  { %618 = vmatpush3.msra.mxu1 %v71_v23  ;;  %584 = vmatprep.subr.mxu0 %v54_v24  ;;  %v35_v38 = vld [vmem:[%s1034_s1 + $0x30] sm:$0xff]  ;;  %v34_v42 = vld [vmem:[%s1034_s1 + $0x28] sm:$0xff]  ;;  %v33_v46 = vld [vmem:[%s1034_s1 + $0x20] sm:$0xff] }
  0x10   :  { %619 = vmatprep.subr.mxu1 %v86_v25  ;;  %585 = vmatpush3.msra.mxu0 %v38_v26  ;;  %v67_v39 = vld [vmem:[%s1034_s1 + $0x130] sm:$0xff]  ;;  %v66_v43 = vld [vmem:[%s1034_s1 + $0x128] sm:$0xff]  ;;  %v65_v47 = vld [vmem:[%s1034_s1 + $0x120] sm:$0xff] }
  0x11   :  { %620 = vmatpush3.msra.mxu1 %v70_v27  ;;  %586 = vmatprep.subr.mxu0 %v53_v28  ;;  %v48_v48 = vld [vmem:[%s1034_s1 + $0x98] sm:$0xff] }
  0x12   :  { %621 = vmatprep.subr.mxu1 %v85_v29  ;;  %587 = vmatpush3.msra.mxu0 %v37_v30  ;;  %v80_v49 = vld [vmem:[%s1034_s1 + $0x198] sm:$0xff] }
  0x13   :  { %622 = vmatpush3.msra.mxu1 %v69_v31  ;;  %588 = vmatprep.subr.mxu0 %v52_v32 }
  0x14   :  { %623 = vmatprep.subr.mxu1 %v84_v33  ;;  %589 = vmatpush3.msra.mxu0 %v36_v34 }
  0x15   :  { %624 = vmatpush3.msra.mxu1 %v68_v35  ;;  %590 = vmatprep.subr.mxu0 %v51_v36 }
  0x16   :  { %625 = vmatprep.subr.mxu1 %v83_v37  ;;  %591 = vmatpush3.msra.mxu0 %v35_v38 }
  0x17   :  { %626 = vmatpush3.msra.mxu1 %v67_v39  ;;  %592 = vmatprep.subr.mxu0 %v50_v40 }
  0x18   :  { %627 = vmatprep.subr.mxu1 %v82_v41  ;;  %593 = vmatpush3.msra.mxu0 %v34_v42 }
  0x19   :  { %628 = vmatpush3.msra.mxu1 %v66_v43 }
  0x1a   :  { %14 = vsyncpa [#allocation5], 0  ;;  %594 = vmatprep.subr.mxu0 %v49_v44  ;;  %629 = vmatprep.subr.mxu1 %v81_v45  ;;  %v32_v50 = vld [vmem:[%s1034_s1 + $0x18] sm:$0xff]  ;;  %v47_v52 = vld [vmem:[%s1034_s1 + $0x90] sm:$0xff]  ;;  %v715_v17 = vmov 0.0   ;;  %vm716_vm2 = vmmov 0  }
  0x1b   :  { %v64_v51 = vld [vmem:[%s1034_s1 + $0x118] sm:$0xff]  ;;  %595 = vmatpush3.msra.mxu0 %v33_v46  ;;  %630 = vmatpush3.msra.mxu1 %v65_v47  ;;  %v79_v53 = vld [vmem:[%s1034_s1 + $0x190] sm:$0xff]  ;;  %v27_v56 = vld [vmem:[%s1033_s0] sm:$0xff]  ;;  %vm268_vm3 = vcmask 130048   ;;  %vm274_vm4 = vcmask 261120   ;;  %s718_s11 = smov [#allocation2]  }
  0x1c   :  { %596 = vmatprep.subr.mxu0 %v48_v48  ;;  %631 = vmatprep.subr.mxu1 %v80_v49  ;;  %v31_v54 = vld [vmem:[%s1034_s1 + $0x10] sm:$0xff]  ;;  %v46_v57 = vld [vmem:[%s1034_s1 + $0x88] sm:$0xff]  ;;  %v45_v62 = vld [vmem:[%s1034_s1 + $0x80] sm:$0xff]  ;;  %v102_v0 = vcombine.high %v27_v56, %v27_v56  ;;  %v368_v48 = vlaneseq  ;;  %s546_s12 = sshll.u32 %s718_s11, 4  ;;  %vm348_vm5 = vcmask 257024   ;;  %s547_s12 = int_to_ptr.vmem [resolvable:$true] %s546_s12 }
  0x1d   :  { %v63_v55 = vld [vmem:[%s1034_s1 + $0x110] sm:$0xff]  ;;  %597 = vmatpush3.msra.mxu0 %v32_v50  ;;  %632 = vmatpush3.msra.mxu1 %v64_v51  ;;  %v78_v58 = vld [vmem:[%s1034_s1 + $0x188] sm:$0xff]  ;;  %v77_v63 = vld [vmem:[%s1034_s1 + $0x180] sm:$0xff]  ;;  %p675_p1 = scmp.lt.s32.totalorder %s547_s12, %s547_s12 }
  0x1e   :  { %v28_v59 = vld [vmem:[%s1033_s0 + $0x8] sm:$0xff]  ;;  %598 = vmatprep.subr.mxu0 %v47_v52  ;;  %633 = vmatprep.subr.mxu1 %v79_v53  ;;  %v29_v1 = vld [vmem:[%s1034_s1] sm:$0xff]  ;;  %v273_v14 = vld [vmem:[%s1038_s5 + $0x18] sm:$0xff]  ;;  %v369_v49 = vshrl.u32 %v368_v48, 7 }
  0x1f   :  { %v30_v60 = vld [vmem:[%s1034_s1 + $0x8] sm:$0xff]  ;;  %599 = vmatpush3.msra.mxu0 %v31_v54  ;;  %634 = vmatpush3.msra.mxu1 %v63_v55  ;;  %v103_v2 = vcombine.high %v28_v59, %v28_v59  ;;  %v61_v3 = vld [vmem:[%s1034_s1 + $0x100] sm:$0xff]  ;;  %v272_v18 = vld [vmem:[%s1038_s5 + $0x10] sm:$0xff] }
  0x20   :  { %v62_v61 = vld [vmem:[%s1034_s1 + $0x108] sm:$0xff]  ;;  %600 = vmatprep.subr.mxu0 %v46_v57  ;;  %635 = vmatprep.subr.mxu1 %v78_v58  ;;  %v568_v6 = vld [vmem:[%s1035_s2] ss:$0 sm:$0xff]  ;;  %s714_s1 = smov 112   ;;  %v365_v35 = vld [vmem:[%s1036_s3 + $0x78] sm:$0xff]  ;;  %v370_v50 = vsub.s32 0, %v369_v49 }
  0x21   :  { %601 = vmatpush3.msra.mxu0 %v30_v60  ;;  %636 = vmatpush3.msra.mxu1 %v62_v61  ;;  %v363_v15 = vld [vmem:[%s1036_s3 + $0x68] sm:$0xff]  ;;  %v362_v16 = vld [vmem:[%s1036_s3 + $0x60] sm:$0xff]  ;;  %v364_v40 = vld [vmem:[%s1036_s3 + $0x70] sm:$0xff]  ;;  %v374_v51 = vsub.s32 1, %v369_v49 }
  0x22   :  { %602 = vmatprep.subr.mxu0 %v45_v62  ;;  %637 = vmatprep.subr.mxu1 %v77_v63  ;;  %v359_v19 = vld [vmem:[%s1036_s3 + $0x48] sm:$0xff]  ;;  %v358_v20 = vld [vmem:[%s1036_s3 + $0x40] sm:$0xff]  ;;  %v361_v42 = vld [vmem:[%s1036_s3 + $0x58] sm:$0xff] }
  0x23   :  { %603 = vmatpush3.msra.mxu0 %v29_v1  ;;  %170 = vmatprep.mubr.f32.mxu0 %v102_v0  ;;  %v355_v21 = vld [vmem:[%s1036_s3 + $0x28] sm:$0xff]  ;;  %v354_v31 = vld [vmem:[%s1036_s3 + $0x20] sm:$0xff]  ;;  %v360_v43 = vld [vmem:[%s1036_s3 + $0x50] sm:$0xff] }
  0x24   :  { %638 = vmatpush3.msra.mxu1 %v61_v3  ;;  %240 = vmatprep.mubr.f32.mxu1 %v103_v2  ;;  %v271_v22 = vld [vmem:[%s1038_s5 + $0x8] sm:$0xff]  ;;  %v270_v32 = vld [vmem:[%s1038_s5] sm:$0xff]  ;;  %s717_s5 = smov 16   ;;  %v357_v44 = vld [vmem:[%s1036_s3 + $0x38] sm:$0xff] }
  0x25   :  { %171 = vmatmul.mubr.f32.vlgmr.msra.gmra.mxu0 %v27_v56  ;;  %241 = vmatmul.mubr.f32.vlgmr.msra.gmra.mxu1 %v28_v59  ;;  %v351_v33 = vld [vmem:[%s1036_s3 + $0x8] sm:$0xff]  ;;  %v350_v34 = vld [vmem:[%s1036_s3] sm:$0xff]  ;;  %v356_v45 = vld [vmem:[%s1036_s3 + $0x30] sm:$0xff] }
  0x26   :  { %647 = vmatprep.subr.mxu0 %v715_v17  ;;  %412 = vmatprep.subr.mxu1 %v363_v15  ;;  %v353_v46 = vld [vmem:[%s1036_s3 + $0x18] sm:$0xff]  ;;  %v352_v47 = vld [vmem:[%s1036_s3 + $0x10] sm:$0xff]  ;;  %v366_v52 = vld [vmem:[%s1037_s4] sm:$0xf]  ;;  %s670_s3 = scalar_lea.vmem %s547_s12, 64 }
  0x27   :  { %648 = vmatpush3.msra.mxu0 %v273_v14  ;;  %413 = vmatpush1.msra.mxu1 %v362_v16  ;;  %v371_v53 = vrot.slane %v366_v52, %v370_v50  ;;  %v375_v54 = vrot.slane %v366_v52, %v374_v51  ;;  %p671_p0 = scmp.ne.s32.totalorder %s547_s12, %s670_s3  ;;  %p676_p2 = scmp.lt.s32.totalorder %s670_s3, %s670_s3 }
  0x28   :  { %649 = vmatprep.subr.mxu0 %v715_v17  ;;  %414 = vmatprep.subr.mxu1 %v359_v19 }
  0x29   :  { %650 = vmatpush3.msra.mxu0 %v272_v18  ;;  %415 = vmatpush1.msra.mxu1 %v358_v20  ;;  %p677_p3 = por %p676_p2, %p675_p1 }
  0x2a   :  { %651 = vmatprep.subr.mxu0 %v715_v17  ;;  %416 = vmatprep.subr.mxu1 %v355_v21 }
  0x2b   :  { %652 = vmatpush3.msra.mxu0 %v271_v22  ;;  %452 = vmatprep.mubr.f32.mxu1 %v715_v17  ;;  %p678_p4 = pnand %p677_p3, %p671_p0 }
  0x2c   :  { %653 = vmatprep.subr.mxu0 %v715_v17  ;;  %417 = vmatpush1.msra.mxu1 %v354_v31 }
  0x2d   :  { %654 = vmatpush3.msra.mxu0 %v270_v32  ;;  %418 = vmatprep.subr.mxu1 %v351_v33 }
  0x2e   :  { %655 = vmatprep.mubr.msk.f32.mxu0 %vm716_vm2, %v715_v17  ;;  %419 = vmatpush1.msra.mxu1 %v350_v34 }
  0x2f   :  { %483 = vmatprep.subr.mxu0 %v365_v35 }
  0xe5   :  { %v604_v4 = vpop.f32.mrf.mxu0  ;;  %v639_v5 = vpop.f32.mrf.mxu1 }
  0xe7   :  { %v605_v7 = vpop.f32.mrf.mxu0  ;;  %v640_v8 = vpop.f32.mrf.mxu1 }
  0xe8   :  { %v606_v9 = vadd.f32 %v605_v7, %v604_v4  ;;  %v641_v11 = vadd.f32 %v640_v8, %v639_v5 }
  0xea   :  { %v173_v10 = vadd.f32 %v606_v9, %v568_v6 }
  0xec   :  { %v243_v12 = vadd.f32 %v641_v11, %v173_v10 }
  0xee   :  { %v246_v13 = vmul.f32 %v243_v12, %v243_v12 }
  0xf0   :  { %248 = vrot.lane.b32.xlu0 %v246_v13, %s714_s1 }
 0x162   :  { %v249_v23 = vpop.permute.xlu0 %248 }
 0x163   :  { %v251_v24 = vadd.f32 %v249_v23, %v246_v13 }
 0x165   :  { %666 = vrsqrt.f32 %v251_v24  ;;  %vm254_vm0 = vcmp.eq.f32.partialorder %v251_v24, inf  ;;  %v257_v27 = vand.u32 2147483648, %v251_v24  ;;  %vm256_vm1 = vcmp.eq.f32.partialorder %v251_v24, 0.0 }
 0x172   :  { %v667_v25 = vpop.eup %666 }
 0x173   :  { %v253_v26 = vmul.f32 %v667_v25, %v251_v24 }
 0x175   :  { %v255_v28 = vsel %vm254_vm0, %v251_v24, %v253_v26 }
 0x176   :  { %v258_v29 = vsel %vm256_vm1, %v257_v27, %v255_v28 }
 0x177   :  { %v259_v30 = vadd.f32 1e-08, %v258_v29 }
 0x179   :  { %668 = vrcp.f32 %v259_v30 }
 0x186   :  { %v669_v36 = vpop.eup %668 }
 0x187   :  { %264 = vrot.lane.b32.xlu0 %v669_v36, %s717_s5  ;;  %v262_v38 = vmul.f32 %v669_v36, %v243_v12 }
 0x1f9   :  { %v265_v37 = vpop.permute.xlu0 %264 }
 0x1fa   :  { %v267_v39 = vmul.f32 %v265_v37, %v243_v12 }
 0x1fc   :  { %v269_v41 = vsel %vm268_vm3, %v262_v38, %v267_v39 }
 0x1fd   :  { %656 = vmatmul.mubr.msk.f32.vlgmr.msra.gmra.mxu0 %vm274_vm4, %v269_v41  ;;  %570 = vmatmul.mubr.msk.f32.vlgmr.msra.gmra.mxu1 %vm274_vm4, %v269_v41 }
 0x1fe   :  { %484 = vmatpush1.msra.mxu0 %v364_v40  ;;  %523 = vmatprep.mubr.f32.mxu0 %v715_v17 }
 0x1ff   :  { %485 = vmatprep.subr.mxu0 %v361_v42 }
 0x200   :  { %486 = vmatpush1.msra.mxu0 %v360_v43 }
 0x201   :  { %487 = vmatprep.subr.mxu0 %v357_v44 }
 0x202   :  { %488 = vmatpush1.msra.mxu0 %v356_v45 }
 0x203   :  { %489 = vmatprep.subr.mxu0 %v353_v46 }
 0x204   :  { %490 = vmatpush1.msra.mxu0 %v352_v47 }
 0x205   :  { %571 = vmatmul.mubr.msk.f32.vlgmr.msra.gmra.mxu0 %vm274_vm4, %v269_v41 }
 0x2bd   :  { %v344_v55 = vpop.f32.mrf.mxu0  ;;  %v454_v56 = vpop.f32.mrf.mxu1 }
 0x2be   :  { %349 = vst.msk [vmem:[#allocation2] sm:$0xf] %vm348_vm5, %v344_v55 }
 0x2bf   :  { %v657_v57 = vpop.f32.mrf.mxu0  ;;  %v456_v58 = vpop.f32.mrf.mxu1 }
 0x2c0   :  { %681 = shalt.err (!%p678_p4)
}
 0x2c1   :  { %549 = dma.vmem_to_hbm [thread:$0]  %s547_s12, 64, %s1039_s6, [#allocation3]   ;;  %v455_v59 = vadd.f32 %v454_v56, %v371_v53  ;;  %v457_v60 = vadd.f32 %v456_v58, %v375_v54  ;;  %v378_v61 = vsub.s32 2, %v369_v49  ;;  %v382_v62 = vsub.s32 3, %v369_v49 }
 0x2c2   :  { %s719_s0 = smov [#allocation4]  }
 0x2c3   :  { %v534_v63 = vcombine.low %v455_v59, %v457_v60  ;;  %v379_v0 = vrot.slane %v366_v52, %v378_v61  ;;  %v383_v1 = vrot.slane %v366_v52, %v382_v62  ;;  %s556_s14 = sshll.u32 %s719_s0, 4  ;;  %s557_s14 = int_to_ptr.vmem [resolvable:$true] %s556_s14 }
 0x2c4   :  { %s690_s15 = scalar_lea.vmem %s557_s14, 256  ;;  %p695_p6 = scmp.lt.s32.totalorder %s557_s14, %s557_s14 }
 0x2c5   :  { %538 = vst [vmem:[#allocation4] sm:$0xff] %v534_v63  ;;  %v525_v2 = vpop.f32.mrf.mxu0  ;;  %p691_p5 = scmp.ne.s32.totalorder %s557_s14, %s690_s15  ;;  %p696_p7 = scmp.lt.s32.totalorder %s690_s15, %s690_s15 }
 0x2c6   :  { %v526_v4 = vadd.f32 %v525_v2, %v379_v0 }
 0x2c7   :  { %v527_v3 = vpop.f32.mrf.mxu0  ;;  %p697_p8 = por %p696_p7, %p695_p6 }
 0x2c8   :  { %v528_v5 = vadd.f32 %v527_v3, %v383_v1 }
 0x2c9   :  { %p698_p9 = pnand %p697_p8, %p691_p5 }
 0x2ca   :  { %v535_v6 = vcombine.low %v526_v4, %v528_v5 }
 0x2cc   :  { %539 = vst [vmem:[#allocation4 + $0x8] sm:$0xff] %v535_v6 }
 0x2cd   :  { %701 = shalt.err (!%p698_p9)
}
 0x2ce   :  { %559 = dma.vmem_to_hbm [thread:$0]  %s557_s14, 256, %s1040_s7, [#allocation5]  }
 0x2cf   :  { %710 = dma.done.wait [#allocation3], 64  }
 0x2d0   :  { %711 = vsyncadd [#allocation3], 4294967232 }
 0x2d1   :  { %712 = dma.done.wait [#allocation5], 256  }
 0x2d2   :  { %713 = vsyncadd [#allocation5], 4294967040 }
 0x2d3   :  { %566 = vsyncpa [#allocation3], 1 }
 0x2d4   :  { %567 = vsyncpa [#allocation5], 1 }

</bundles_post_ra>
